<compile_context>
chip_gen: v6e
topology: v6e:2x2x1
jax: 0.10.0
libtpu: 0.0.40
codegen_flags: <defaults>
</compile_context>

<pallas_src>
import math

import jax
import jax.numpy as jnp
from jax.experimental import pallas as pl
from jax.experimental.pallas import tpu as pltpu

PAD_D = 128        # lane padding for every feature dimension
N_LAYERS = 4
N_CLASSES = 2      # real size of the final logits
NEG_BIG = -1e30    # folded into W4's constant-lane row; replaces any in-kernel mask


def _mlp_kernel(x_ref, w_ref, out_ref):
    # x_ref: (1,128)  w_ref: (4,128,128)  out_ref: (1,2)
    # Bias is folded into the weights (affine augmentation lane 127), so each layer is a
    # single MXU dot followed by ReLU; the constant-1 lane survives ReLU by construction.
    h = x_ref[...]
    for k in range(N_LAYERS - 1):                       # static unroll: 3 x (dot + relu)
        h = jnp.maximum(
            jnp.dot(h, w_ref[k], preferred_element_type=jnp.float32), 0.0)
    logits = jnp.dot(h, w_ref[N_LAYERS - 1], preferred_element_type=jnp.float32)
    # Padded lanes (>= 2) hold ~-1e30 (folded into W4 row 127), so exp() kills them; no mask.
    m = jnp.max(logits, axis=-1, keepdims=True)
    lse = jnp.log(jnp.sum(jnp.exp(logits - m), axis=-1, keepdims=True)) + m
    out_ref[...] = (logits - lse)[:, :N_CLASSES]        # tiny masked store, no post-kernel slice


def pack_params(start, w1, b1, w2, b2, w3, b3, w4, b4):
    """One-time init-side packing (NOT in the per-call path).

    * Transpose torch-style (out,in) weights to (in,out) and zero-pad to 128x128.
    * Affine augmentation: the bias goes into weight row 127; W[k][127,127] = 1.0 keeps the
      constant-1 activation lane alive through ReLU (column 127 is zero everywhere else, so
      the constant lane never leaks into real lanes).
    * Last layer: row 127 holds the bias in lanes 0..1 and NEG_BIG in lanes 2..127 so the
      padded logits are killed by exp() in log_softmax (no in-kernel mask needed).
    * The input row gets start in lanes 0..39 and the constant 1.0 in lane 127.
    """
    def pad_affine(w, b, last=False):
        out = jnp.zeros((PAD_D, PAD_D), jnp.float32)
        out = out.at[: w.shape[1], : w.shape[0]].set(w.T.astype(jnp.float32))
        if last:
            row = jnp.full((PAD_D,), NEG_BIG, jnp.float32)
            row = row.at[: b.shape[0]].set(b.astype(jnp.float32))
            # lane 127 stays NEG_BIG: the constant lane is not needed after the last layer.
        else:
            row = jnp.zeros((PAD_D,), jnp.float32)
            row = row.at[: b.shape[0]].set(b.astype(jnp.float32))
            row = row.at[PAD_D - 1].set(1.0)            # keep the constant-1 lane through ReLU
        return out.at[PAD_D - 1, :].set(row)

    w_packed = jnp.stack([pad_affine(w1, b1),
                          pad_affine(w2, b2),
                          pad_affine(w3, b3),
                          pad_affine(w4, b4, last=True)])            # (4,128,128)
    x_packed = jnp.zeros((1, PAD_D), jnp.float32)
    x_packed = x_packed.at[0, : start.shape[0]].set(start.astype(jnp.float32))
    x_packed = x_packed.at[0, PAD_D - 1].set(1.0)                    # affine constant lane
    return x_packed, w_packed


@jax.jit
def network_forward(x_packed, w_packed):
    """Whole MLP in a single grid-less Pallas kernel; returns shape (2,)."""
    vmem = pl.BlockSpec(memory_space=pltpu.MemorySpace.VMEM)
    out = pl.pallas_call(
        _mlp_kernel,
        out_shape=jax.ShapeDtypeStruct((1, N_CLASSES), jnp.float32),
        in_specs=[vmem, vmem],
        out_specs=vmem,
    )(x_packed, w_packed)
    return out.reshape(N_CLASSES)                                    # free reshape, no slice op


def _torch_linear_init(key, fan_out, fan_in):
    """Deterministic init mimicking torch.nn.Linear defaults (uniform +-1/sqrt(fan_in))."""
    kw, kb = jax.random.split(key)
    bound = 1.0 / math.sqrt(fan_in)
    w = jax.random.uniform(kw, (fan_out, fan_in), jnp.float32, -bound, bound)
    b = jax.random.uniform(kb, (fan_out,), jnp.float32, -bound, bound)
    return w, b


def _reference(start, w1, b1, w2, b2, w3, b3, w4, b4):
    x = start
    x = jnp.maximum(x @ w1.T + b1, 0.0)
    x = jnp.maximum(x @ w2.T + b2, 0.0)
    x = jnp.maximum(x @ w3.T + b3, 0.0)
    x = x @ w4.T + b4
    return x - jax.scipy.special.logsumexp(x, axis=-1, keepdims=True)


if __name__ == "__main__":
    key = jax.random.PRNGKey(0)
    k_start, k1, k2, k3, k4 = jax.random.split(key, 5)

    # Parameter shapes from the module's __init__ (deterministic synthetic init).
    start = jax.random.normal(k_start, (40,), jnp.float32) / math.sqrt(40.0)
    w1, b1 = _torch_linear_init(k1, 40, 40)
    w2, b2 = _torch_linear_init(k2, 20, 40)
    w3, b3 = _torch_linear_init(k3, 10, 20)
    w4, b4 = _torch_linear_init(k4, 2, 10)

    # One-time packing (init), then the cheap per-call forward.
    x_packed, w_packed = pack_params(start, w1, b1, w2, b2, w3, b3, w4, b4)
    x_packed, w_packed = jax.block_until_ready((x_packed, w_packed))

    out = network_forward(x_packed, w_packed)
    out = jax.block_until_ready(out)

    ref = _reference(start, w1, b1, w2, b2, w3, b3, w4, b4)
    assert out.shape == (N_CLASSES,), out.shape
    assert jnp.allclose(out, ref, atol=1e-5, rtol=1e-5), (out, ref)

    print("KERNEL_OK")
</pallas_src>

<mosaic_0001>
module attributes {stable_mosaic.version = 11 : i64} {
  func.func @_mlp_kernel(%arg0: memref<1x128xf32, #tpu.memory_space<vmem>>, %arg1: memref<4x128x128xf32, #tpu.memory_space<vmem>>, %arg2: memref<1x2xf32, #tpu.memory_space<vmem>>) attributes {dimension_semantics = [], scalar_prefetch = 0 : i64, scratch_operands = 0 : i64, tpu.core_type = #tpu.core_type<tc>} {
    %c0 = arith.constant 0 : index
    %c0_0 = arith.constant 0 : index
    %0 = vector.load %arg0[%c0, %c0_0] : memref<1x128xf32, #tpu.memory_space<vmem>>, vector<1x128xf32>
    %c0_1 = arith.constant 0 : index
    %c0_2 = arith.constant 0 : index
    %c0_3 = arith.constant 0 : index
    %1 = vector.load %arg1[%c0_1, %c0_2, %c0_3] : memref<4x128x128xf32, #tpu.memory_space<vmem>>, vector<1x128x128xf32>
    %2 = vector.shape_cast %1 : vector<1x128x128xf32> to vector<128x128xf32>
    %cst = arith.constant dense<0.000000e+00> : vector<1x128xf32>
    %3 = tpu.matmul %0, %2, %cst {dimension_numbers = #tpu.dot_dimension_numbers<[1], [0], [0], [1], [0, 0, 1, 1], [], []>} : vector<1x128xf32>, vector<128x128xf32>, vector<1x128xf32> -> vector<1x128xf32>
    %cst_4 = arith.constant 0.000000e+00 : f32
    %4 = vector.broadcast %cst_4 : f32 to vector<1x128xf32>
    %5 = arith.maximumf %3, %4 : vector<1x128xf32>
    %c1 = arith.constant 1 : index
    %c0_5 = arith.constant 0 : index
    %c0_6 = arith.constant 0 : index
    %6 = vector.load %arg1[%c1, %c0_5, %c0_6] : memref<4x128x128xf32, #tpu.memory_space<vmem>>, vector<1x128x128xf32>
    %7 = vector.shape_cast %6 : vector<1x128x128xf32> to vector<128x128xf32>
    %cst_7 = arith.constant dense<0.000000e+00> : vector<1x128xf32>
    %8 = tpu.matmul %5, %7, %cst_7 {dimension_numbers = #tpu.dot_dimension_numbers<[1], [0], [0], [1], [0, 0, 1, 1], [], []>} : vector<1x128xf32>, vector<128x128xf32>, vector<1x128xf32> -> vector<1x128xf32>
    %cst_8 = arith.constant 0.000000e+00 : f32
    %9 = vector.broadcast %cst_8 : f32 to vector<1x128xf32>
    %10 = arith.maximumf %8, %9 : vector<1x128xf32>
    %c2 = arith.constant 2 : index
    %c0_9 = arith.constant 0 : index
    %c0_10 = arith.constant 0 : index
    %11 = vector.load %arg1[%c2, %c0_9, %c0_10] : memref<4x128x128xf32, #tpu.memory_space<vmem>>, vector<1x128x128xf32>
    %12 = vector.shape_cast %11 : vector<1x128x128xf32> to vector<128x128xf32>
    %cst_11 = arith.constant dense<0.000000e+00> : vector<1x128xf32>
    %13 = tpu.matmul %10, %12, %cst_11 {dimension_numbers = #tpu.dot_dimension_numbers<[1], [0], [0], [1], [0, 0, 1, 1], [], []>} : vector<1x128xf32>, vector<128x128xf32>, vector<1x128xf32> -> vector<1x128xf32>
    %cst_12 = arith.constant 0.000000e+00 : f32
    %14 = vector.broadcast %cst_12 : f32 to vector<1x128xf32>
    %15 = arith.maximumf %13, %14 : vector<1x128xf32>
    %c3 = arith.constant 3 : index
    %c0_13 = arith.constant 0 : index
    %c0_14 = arith.constant 0 : index
    %16 = vector.load %arg1[%c3, %c0_13, %c0_14] : memref<4x128x128xf32, #tpu.memory_space<vmem>>, vector<1x128x128xf32>
    %17 = vector.shape_cast %16 : vector<1x128x128xf32> to vector<128x128xf32>
    %cst_15 = arith.constant dense<0.000000e+00> : vector<1x128xf32>
    %18 = tpu.matmul %15, %17, %cst_15 {dimension_numbers = #tpu.dot_dimension_numbers<[1], [0], [0], [1], [0, 0, 1, 1], [], []>} : vector<1x128xf32>, vector<128x128xf32>, vector<1x128xf32> -> vector<1x128xf32>
    %cst_16 = arith.constant dense<0xFF800000> : vector<1xf32>
    %19 = vector.multi_reduction <maximumf>, %18, %cst_16 [1] : vector<1x128xf32> to vector<1xf32>
    %20 = vector.shape_cast %19 : vector<1xf32> to vector<1x1xf32>
    %21 = vector.broadcast %20 : vector<1x1xf32> to vector<1x128xf32>
    %22 = arith.subf %18, %21 : vector<1x128xf32>
    %23 = math.exp %22 : vector<1x128xf32>
    %cst_17 = arith.constant dense<0.000000e+00> : vector<1xf32>
    %24 = vector.multi_reduction <add>, %23, %cst_17 [1] : vector<1x128xf32> to vector<1xf32>
    %25 = vector.shape_cast %24 : vector<1xf32> to vector<1x1xf32>
    %26 = math.log %25 : vector<1x1xf32>
    %27 = arith.addf %26, %20 : vector<1x1xf32>
    %28 = vector.broadcast %27 : vector<1x1xf32> to vector<1x128xf32>
    %29 = arith.subf %18, %28 : vector<1x128xf32>
    %30 = vector.extract_strided_slice %29 {offsets = [0, 0], sizes = [1, 2], strides = [1, 1]} : vector<1x128xf32> to vector<1x2xf32>
    %c0_18 = arith.constant 0 : index
    %c0_19 = arith.constant 0 : index
    %31 = vector.load %arg2[%c0_18, %c0_19] : memref<1x2xf32, #tpu.memory_space<vmem>>, vector<1x2xf32>
    tpu.vector_store %arg2[%c0_18, %c0_19], %30 {strides = array<i32>} : memref<1x2xf32, #tpu.memory_space<vmem>>, vector<1x2xf32>,
    return
  }
}

</mosaic_0001>

<bundles_post_ra>
// kernel: network_forward.1
= control target key start
LH: loop header
LB: loop body
LE: loop exit
PB: predicated region body
PF: predicated region fallthrough
CT: control target
= control target key end

     0   :  { %7 = vsyncpa [#allocation3], 0  ;;  %s809_s0 = inlined_call_operand.hbm [shape: f32[1,128], index: 0, kind: input, shape index: {}]   ;;  %s810_s1 = inlined_call_operand.hbm [shape: f32[4,128,128], index: 1, kind: input, shape index: {}]   ;;  %s811_s2 = inlined_call_operand.hbm [shape: f32[1,2], index: 2, kind: output, shape index: {}]  }
   0x1   :  { %8 = vsyncpa [#allocation6], 0 }
   0x2   :  { %9 = vsyncpa [#allocation4], 0  ;;  %s706_s9 = smov [#allocation2]   ;;  %s707_s11 = smov [#allocation5]  }
   0x3   :  { %s16_s10 = sshll.u32 %s706_s9, 4  ;;  %s25_s12 = sshll.u32 %s707_s11, 4  ;;  %s17_s10 = int_to_ptr.vmem [resolvable:$true] %s16_s10  ;;  %s26_s12 = int_to_ptr.vmem [resolvable:$true] %s25_s12 }
   0x4   :  { %s648_s13 = scalar_lea.vmem %s17_s10, 16  ;;  %s652_s14 = scalar_lea.vmem %s17_s10, 32 }
   0x5   :  { %p649_p0 = scmp.ne.s32.totalorder %s17_s10, %s648_s13  ;;  %p653_p1 = scmp.lt.s32.totalorder %s17_s10, %s17_s10 }
   0x6   :  { %p654_p2 = scmp.lt.s32.totalorder %s652_s14, %s648_s13 }
   0x8   :  { %p655_p3 = por %p654_p2, %p653_p1 }
   0xa   :  { %p656_p4 = pnand %p655_p3, %p649_p0 }
   0xc   :  { %659 = shalt.err (!%p656_p4)
}
   0xd   :  { %19 = dma.hbm_to_vmem [thread:$0]  %s809_s0, 16, %s17_s10, [#allocation3]  }
   0xe   :  { %s668_s17 = scalar_lea.vmem %s26_s12, 8192  ;;  %p673_p6 = scmp.lt.s32.totalorder %s26_s12, %s26_s12 }
   0xf   :  { %p669_p5 = scmp.ne.s32.totalorder %s26_s12, %s668_s17  ;;  %p674_p7 = scmp.lt.s32.totalorder %s668_s17, %s668_s17 }
  0x11   :  { %p675_p8 = por %p674_p7, %p673_p6 }
  0x13   :  { %p676_p9 = pnand %p675_p8, %p669_p5 }
  0x15   :  { %679 = shalt.err (!%p676_p9)
}
  0x16   :  { %s708_s18 = smov 128   ;;  %s709_s19 = smov 8  }
  0x17   :  { %31 = dma.hbm_to_vmem [thread:$0]  %s810_s1, 8192, %s26_s12, [#allocation6], %s708_s18, %s708_s18, %s709_s19  }
  0x18   :  { %700 = dma.done.wait [#allocation3], 16  }
  0x19   :  { %701 = vsyncadd [#allocation3], 4294967280 }
  0x1a   :  { %702 = dma.done.wait [#allocation6], 8192  }
  0x1b   :  { %703 = vsyncadd [#allocation6], 4294959104  ;;  %v710_v0 = vmov 0.0   ;;  %vm711_vm0 = vmmov 0   ;;  %v54_v1 = vld [vmem:[#allocation5 + $0x78] sm:$0xff]  ;;  %v53_v2 = vld [vmem:[#allocation5 + $0x70] sm:$0xff] }
  0x1c   :  { %489 = vmatprep.subr.mxu0 %v710_v0  ;;  %521 = vmatprep.mubr.msk.f32.mxu0 %vm711_vm0, %v710_v0  ;;  %v52_v3 = vld [vmem:[#allocation5 + $0x68] sm:$0xff]  ;;  %v51_v4 = vld [vmem:[#allocation5 + $0x60] sm:$0xff]  ;;  %v142_v5 = vld [vmem:[#allocation5 + $0xf8] sm:$0xff]  ;;  %vm389_vm1 = vcmask 1040384   ;;  %s712_s0 = smov [#allocation7]   ;;  %vm403_vm2 = vcmask 8192  }
  0x1d   :  { %524 = vmatprep.subr.mxu1 %v710_v0  ;;  %556 = vmatprep.mubr.msk.f32.mxu1 %vm711_vm0, %v710_v0  ;;  %v50_v6 = vld [vmem:[#allocation5 + $0x58] sm:$0xff]  ;;  %v141_v7 = vld [vmem:[#allocation5 + $0xf0] sm:$0xff]  ;;  %v140_v8 = vld [vmem:[#allocation5 + $0xe8] sm:$0xff]  ;;  %s411_s1 = sshll.u32 %s712_s0, 4  ;;  %s412_s1 = int_to_ptr.vmem [resolvable:$true] %s411_s1 }
  0x1e   :  { %490 = vmatpush3.msra.mxu0 %v54_v1  ;;  %525 = vmatpush3.msra.mxu1 %v142_v5  ;;  %v49_v9 = vld [vmem:[#allocation5 + $0x50] sm:$0xff]  ;;  %v139_v10 = vld [vmem:[#allocation5 + $0xe0] sm:$0xff]  ;;  %v48_v11 = vld [vmem:[#allocation5 + $0x48] sm:$0xff]  ;;  %s680_s22 = scalar_lea.vmem %s412_s1, 16  ;;  %s684_s23 = scalar_lea.vmem %s412_s1, 32 }
  0x1f   :  { %491 = vmatprep.subr.mxu0 %v710_v0  ;;  %526 = vmatprep.subr.mxu1 %v710_v0  ;;  %v138_v12 = vld [vmem:[#allocation5 + $0xd8] sm:$0xff]  ;;  %v47_v13 = vld [vmem:[#allocation5 + $0x40] sm:$0xff]  ;;  %v137_v14 = vld [vmem:[#allocation5 + $0xd0] sm:$0xff]  ;;  %p681_p10 = scmp.ne.s32.totalorder %s412_s1, %s680_s22  ;;  %p685_p11 = scmp.lt.s32.totalorder %s412_s1, %s412_s1 }
  0x20   :  { %492 = vmatpush3.msra.mxu0 %v53_v2  ;;  %527 = vmatpush3.msra.mxu1 %v141_v7  ;;  %v46_v15 = vld [vmem:[#allocation5 + $0x38] sm:$0xff]  ;;  %v136_v16 = vld [vmem:[#allocation5 + $0xc8] sm:$0xff]  ;;  %v45_v17 = vld [vmem:[#allocation5 + $0x30] sm:$0xff]  ;;  %p686_p12 = scmp.lt.s32.totalorder %s684_s23, %s680_s22 }
  0x21   :  { %493 = vmatprep.subr.mxu0 %v710_v0  ;;  %528 = vmatprep.subr.mxu1 %v710_v0  ;;  %v135_v18 = vld [vmem:[#allocation5 + $0xc0] sm:$0xff]  ;;  %v44_v19 = vld [vmem:[#allocation5 + $0x28] sm:$0xff]  ;;  %v134_v20 = vld [vmem:[#allocation5 + $0xb8] sm:$0xff] }
  0x22   :  { %494 = vmatpush3.msra.mxu0 %v52_v3  ;;  %529 = vmatpush3.msra.mxu1 %v140_v8  ;;  %v43_v21 = vld [vmem:[#allocation5 + $0x20] sm:$0xff]  ;;  %v133_v22 = vld [vmem:[#allocation5 + $0xb0] sm:$0xff]  ;;  %v42_v23 = vld [vmem:[#allocation5 + $0x18] sm:$0xff]  ;;  %p687_p13 = por %p686_p12, %p685_p11 }
  0x23   :  { %495 = vmatprep.subr.mxu0 %v710_v0  ;;  %530 = vmatprep.subr.mxu1 %v710_v0  ;;  %v132_v24 = vld [vmem:[#allocation5 + $0xa8] sm:$0xff]  ;;  %v41_v25 = vld [vmem:[#allocation5 + $0x10] sm:$0xff]  ;;  %v131_v26 = vld [vmem:[#allocation5 + $0xa0] sm:$0xff] }
  0x24   :  { %496 = vmatpush3.msra.mxu0 %v51_v4  ;;  %531 = vmatpush3.msra.mxu1 %v139_v10  ;;  %v40_v27 = vld [vmem:[#allocation5 + $0x8] sm:$0xff]  ;;  %v130_v28 = vld [vmem:[#allocation5 + $0x98] sm:$0xff]  ;;  %v39_v29 = vld [vmem:[#allocation5] sm:$0xff]  ;;  %p688_p0 = pnand %p687_p13, %p681_p10 }
  0x25   :  { %497 = vmatprep.subr.mxu0 %v710_v0  ;;  %532 = vmatprep.subr.mxu1 %v710_v0  ;;  %v38_v30 = vld [vmem:[#allocation2] sm:$0x1]  ;;  %v129_v31 = vld [vmem:[#allocation5 + $0x90] sm:$0xff]  ;;  %v128_v32 = vld [vmem:[#allocation5 + $0x88] sm:$0xff] }
  0x26   :  { %498 = vmatpush3.msra.mxu0 %v50_v6  ;;  %533 = vmatpush3.msra.mxu1 %v138_v12  ;;  %v127_v33 = vld [vmem:[#allocation5 + $0x80] sm:$0xff]  ;;  %v230_v34 = vld [vmem:[#allocation5 + $0x178] sm:$0xff]  ;;  %v229_v35 = vld [vmem:[#allocation5 + $0x170] sm:$0xff] }
  0x27   :  { %499 = vmatprep.subr.mxu0 %v710_v0  ;;  %534 = vmatprep.subr.mxu1 %v710_v0  ;;  %v228_v36 = vld [vmem:[#allocation5 + $0x168] sm:$0xff]  ;;  %v227_v37 = vld [vmem:[#allocation5 + $0x160] sm:$0xff]  ;;  %v226_v38 = vld [vmem:[#allocation5 + $0x158] sm:$0xff] }
  0x28   :  { %500 = vmatpush3.msra.mxu0 %v49_v9  ;;  %535 = vmatpush3.msra.mxu1 %v137_v14  ;;  %v225_v39 = vld [vmem:[#allocation5 + $0x150] sm:$0xff]  ;;  %v224_v40 = vld [vmem:[#allocation5 + $0x148] sm:$0xff]  ;;  %v223_v41 = vld [vmem:[#allocation5 + $0x140] sm:$0xff] }
  0x29   :  { %501 = vmatprep.subr.mxu0 %v710_v0  ;;  %536 = vmatprep.subr.mxu1 %v710_v0  ;;  %v222_v42 = vld [vmem:[#allocation5 + $0x138] sm:$0xff]  ;;  %v221_v43 = vld [vmem:[#allocation5 + $0x130] sm:$0xff]  ;;  %v220_v44 = vld [vmem:[#allocation5 + $0x128] sm:$0xff] }
  0x2a   :  { %502 = vmatpush3.msra.mxu0 %v48_v11  ;;  %537 = vmatpush3.msra.mxu1 %v136_v16  ;;  %v219_v45 = vld [vmem:[#allocation5 + $0x120] sm:$0xff]  ;;  %v218_v46 = vld [vmem:[#allocation5 + $0x118] sm:$0xff]  ;;  %v217_v47 = vld [vmem:[#allocation5 + $0x110] sm:$0xff] }
  0x2b   :  { %503 = vmatprep.subr.mxu0 %v710_v0  ;;  %538 = vmatprep.subr.mxu1 %v710_v0  ;;  %v216_v51 = vld [vmem:[#allocation5 + $0x108] sm:$0xff]  ;;  %v215_v52 = vld [vmem:[#allocation5 + $0x100] sm:$0xff]  ;;  %v318_v53 = vld [vmem:[#allocation5 + $0x1f8] sm:$0xff] }
  0x2c   :  { %504 = vmatpush3.msra.mxu0 %v47_v13  ;;  %539 = vmatpush3.msra.mxu1 %v135_v18  ;;  %v317_v54 = vld [vmem:[#allocation5 + $0x1f0] sm:$0xff]  ;;  %v316_v55 = vld [vmem:[#allocation5 + $0x1e8] sm:$0xff]  ;;  %v315_v56 = vld [vmem:[#allocation5 + $0x1e0] sm:$0xff] }
  0x2d   :  { %505 = vmatprep.subr.mxu0 %v710_v0  ;;  %540 = vmatprep.subr.mxu1 %v710_v0  ;;  %v314_v57 = vld [vmem:[#allocation5 + $0x1d8] sm:$0xff]  ;;  %v313_v58 = vld [vmem:[#allocation5 + $0x1d0] sm:$0xff]  ;;  %v312_v59 = vld [vmem:[#allocation5 + $0x1c8] sm:$0xff] }
  0x2e   :  { %506 = vmatpush3.msra.mxu0 %v46_v15  ;;  %541 = vmatpush3.msra.mxu1 %v134_v20  ;;  %v311_v60 = vld [vmem:[#allocation5 + $0x1c0] sm:$0xff]  ;;  %v310_v61 = vld [vmem:[#allocation5 + $0x1b8] sm:$0xff]  ;;  %v309_v62 = vld [vmem:[#allocation5 + $0x1b0] sm:$0xff] }
  0x2f   :  { %507 = vmatprep.subr.mxu0 %v710_v0  ;;  %542 = vmatprep.subr.mxu1 %v710_v0  ;;  %v308_v63 = vld [vmem:[#allocation5 + $0x1a8] sm:$0xff]  ;;  %v307_v1 = vld [vmem:[#allocation5 + $0x1a0] sm:$0xff]  ;;  %v306_v2 = vld [vmem:[#allocation5 + $0x198] sm:$0xff] }
  0x30   :  { %508 = vmatpush3.msra.mxu0 %v45_v17  ;;  %543 = vmatpush3.msra.mxu1 %v133_v22  ;;  %v305_v3 = vld [vmem:[#allocation5 + $0x190] sm:$0xff]  ;;  %v304_v7 = vld [vmem:[#allocation5 + $0x188] sm:$0xff]  ;;  %v303_v8 = vld [vmem:[#allocation5 + $0x180] sm:$0xff] }
  0x31   :  { %509 = vmatprep.subr.mxu0 %v710_v0  ;;  %544 = vmatprep.subr.mxu1 %v710_v0 }
  0x32   :  { %510 = vmatpush3.msra.mxu0 %v44_v19  ;;  %545 = vmatpush3.msra.mxu1 %v132_v24 }
  0x33   :  { %511 = vmatprep.subr.mxu0 %v710_v0  ;;  %546 = vmatprep.subr.mxu1 %v710_v0 }
  0x34   :  { %512 = vmatpush3.msra.mxu0 %v43_v21  ;;  %547 = vmatpush3.msra.mxu1 %v131_v26 }
  0x35   :  { %513 = vmatprep.subr.mxu0 %v710_v0  ;;  %548 = vmatprep.subr.mxu1 %v710_v0 }
  0x36   :  { %514 = vmatpush3.msra.mxu0 %v42_v23  ;;  %549 = vmatpush3.msra.mxu1 %v130_v28 }
  0x37   :  { %515 = vmatprep.subr.mxu0 %v710_v0  ;;  %550 = vmatprep.subr.mxu1 %v710_v0 }
  0x38   :  { %516 = vmatpush3.msra.mxu0 %v41_v25  ;;  %551 = vmatpush3.msra.mxu1 %v129_v31 }
  0x39   :  { %517 = vmatprep.subr.mxu0 %v710_v0  ;;  %552 = vmatprep.subr.mxu1 %v710_v0 }
  0x3a   :  { %518 = vmatpush3.msra.mxu0 %v40_v27  ;;  %553 = vmatpush3.msra.mxu1 %v128_v32 }
  0x3b   :  { %519 = vmatprep.subr.mxu0 %v710_v0  ;;  %554 = vmatprep.subr.mxu1 %v710_v0 }
  0x3c   :  { %520 = vmatpush3.msra.mxu0 %v39_v29  ;;  %555 = vmatpush3.msra.mxu1 %v127_v33 }
  0x3d   :  { %522 = vmatmul.mubr.f32.vlgmr.msra.gmra.mxu0 %v38_v30  ;;  %559 = vmatprep.subr.mxu0 %v710_v0 }
  0x3e   :  { %591 = vmatprep.mubr.msk.f32.mxu0 %vm711_vm0, %v710_v0  ;;  %594 = vmatprep.subr.mxu1 %v710_v0 }
  0x3f   :  { %560 = vmatpush3.msra.mxu0 %v230_v34 }
  0x40   :  { %561 = vmatprep.subr.mxu0 %v710_v0 }
  0x41   :  { %562 = vmatpush3.msra.mxu0 %v229_v35 }
  0x42   :  { %563 = vmatprep.subr.mxu0 %v710_v0 }
  0x43   :  { %564 = vmatpush3.msra.mxu0 %v228_v36 }
  0x44   :  { %565 = vmatprep.subr.mxu0 %v710_v0 }
  0x45   :  { %566 = vmatpush3.msra.mxu0 %v227_v37 }
  0x46   :  { %567 = vmatprep.subr.mxu0 %v710_v0 }
  0x47   :  { %568 = vmatpush3.msra.mxu0 %v226_v38 }
  0x48   :  { %569 = vmatprep.subr.mxu0 %v710_v0 }
  0x49   :  { %570 = vmatpush3.msra.mxu0 %v225_v39 }
  0x4a   :  { %571 = vmatprep.subr.mxu0 %v710_v0 }
  0x4b   :  { %572 = vmatpush3.msra.mxu0 %v224_v40 }
  0x4c   :  { %573 = vmatprep.subr.mxu0 %v710_v0 }
  0x4d   :  { %574 = vmatpush3.msra.mxu0 %v223_v41 }
  0x4e   :  { %575 = vmatprep.subr.mxu0 %v710_v0 }
  0x4f   :  { %576 = vmatpush3.msra.mxu0 %v222_v42 }
  0x50   :  { %577 = vmatprep.subr.mxu0 %v710_v0 }
  0x51   :  { %578 = vmatpush3.msra.mxu0 %v221_v43 }
  0x52   :  { %579 = vmatprep.subr.mxu0 %v710_v0 }
  0x53   :  { %580 = vmatpush3.msra.mxu0 %v220_v44 }
  0x54   :  { %581 = vmatprep.subr.mxu0 %v710_v0 }
  0x55   :  { %582 = vmatpush3.msra.mxu0 %v219_v45 }
  0x56   :  { %583 = vmatprep.subr.mxu0 %v710_v0 }
  0x57   :  { %584 = vmatpush3.msra.mxu0 %v218_v46 }
  0x58   :  { %585 = vmatprep.subr.mxu0 %v710_v0 }
  0x59   :  { %586 = vmatpush3.msra.mxu0 %v217_v47 }
  0x5a   :  { %587 = vmatprep.subr.mxu0 %v710_v0 }
  0x5b   :  { %588 = vmatpush3.msra.mxu0 %v216_v51 }
  0x5c   :  { %589 = vmatprep.subr.mxu0 %v710_v0 }
  0x5d   :  { %590 = vmatpush3.msra.mxu0 %v215_v52 }
  0xfd   :  { %v121_v48 = vpop.f32.mrf.mxu0 }
  0xfe   :  { %v125_v49 = vmax.f32 %v121_v48, 0.0 }
  0xff   :  { %v523_v50 = vpop.f32.mrf.mxu0 }
 0x100   :  { %557 = vmatmul.mubr.f32.vlgmr.msra.gmra.mxu1 %v125_v49 }
 0x101   :  { %626 = vmatprep.mubr.msk.f32.mxu1 %vm711_vm0, %v710_v0  ;;  %595 = vmatpush3.msra.mxu1 %v318_v53 }
 0x102   :  { %596 = vmatprep.subr.mxu1 %v710_v0 }
 0x103   :  { %597 = vmatpush3.msra.mxu1 %v317_v54 }
 0x104   :  { %598 = vmatprep.subr.mxu1 %v710_v0 }
 0x105   :  { %599 = vmatpush3.msra.mxu1 %v316_v55 }
 0x106   :  { %600 = vmatprep.subr.mxu1 %v710_v0 }
 0x107   :  { %601 = vmatpush3.msra.mxu1 %v315_v56 }
 0x108   :  { %602 = vmatprep.subr.mxu1 %v710_v0 }
 0x109   :  { %603 = vmatpush3.msra.mxu1 %v314_v57 }
 0x10a   :  { %604 = vmatprep.subr.mxu1 %v710_v0 }
 0x10b   :  { %605 = vmatpush3.msra.mxu1 %v313_v58 }
 0x10c   :  { %606 = vmatprep.subr.mxu1 %v710_v0 }
 0x10d   :  { %607 = vmatpush3.msra.mxu1 %v312_v59 }
 0x10e   :  { %608 = vmatprep.subr.mxu1 %v710_v0 }
 0x10f   :  { %609 = vmatpush3.msra.mxu1 %v311_v60 }
 0x110   :  { %610 = vmatprep.subr.mxu1 %v710_v0 }
 0x111   :  { %611 = vmatpush3.msra.mxu1 %v310_v61 }
 0x112   :  { %612 = vmatprep.subr.mxu1 %v710_v0 }
 0x113   :  { %613 = vmatpush3.msra.mxu1 %v309_v62 }
 0x114   :  { %614 = vmatprep.subr.mxu1 %v710_v0 }
 0x115   :  { %615 = vmatpush3.msra.mxu1 %v308_v63 }
 0x116   :  { %616 = vmatprep.subr.mxu1 %v710_v0 }
 0x117   :  { %617 = vmatpush3.msra.mxu1 %v307_v1 }
 0x118   :  { %618 = vmatprep.subr.mxu1 %v710_v0 }
 0x119   :  { %619 = vmatpush3.msra.mxu1 %v306_v2 }
 0x11a   :  { %620 = vmatprep.subr.mxu1 %v710_v0 }
 0x11b   :  { %621 = vmatpush3.msra.mxu1 %v305_v3 }
 0x11c   :  { %622 = vmatprep.subr.mxu1 %v710_v0 }
 0x11d   :  { %623 = vmatpush3.msra.mxu1 %v304_v7 }
 0x11e   :  { %624 = vmatprep.subr.mxu1 %v710_v0 }
 0x11f   :  { %625 = vmatpush3.msra.mxu1 %v303_v8 }
 0x1c0   :  { %v209_v4 = vpop.f32.mrf.mxu1 }
 0x1c1   :  { %v213_v5 = vmax.f32 %v209_v4, 0.0 }
 0x1c2   :  { %v558_v6 = vpop.f32.mrf.mxu1 }
 0x1c3   :  { %592 = vmatmul.mubr.f32.vlgmr.msra.gmra.mxu0 %v213_v5 }
 0x283   :  { %v297_v9 = vpop.f32.mrf.mxu0 }
 0x284   :  { %v301_v10 = vmax.f32 %v297_v9, 0.0 }
 0x285   :  { %v593_v11 = vpop.f32.mrf.mxu0 }
 0x286   :  { %627 = vmatmul.mubr.f32.vlgmr.msra.gmra.mxu1 %v301_v10 }
 0x346   :  { %v385_v12 = vpop.f32.mrf.mxu1 }
 0x347   :  { %v390_v13 = vsel %vm389_vm1, %v385_v12, -inf }
 0x348   :  { %391 = vmax.xlane.f32.xlu0 %v390_v13  ;;  %v628_v14 = vpop.f32.mrf.mxu1 }
 0x3d1   :  { %v392_v15 = vpop.xlane.xlu0 %391 }
 0x3d2   :  { %v393_v16 = vsub.f32 %v385_v12, %v392_v15 }
 0x3d4   :  { %v394_v17 = vmul.f32 1.442695, %v393_v16 }
 0x3d6   :  { %636 = vpow2.f32 %v394_v17 }
 0x3e3   :  { %v637_v18 = vpop.eup %636 }
 0x3e4   :  { %v396_v19 = vsel %vm389_vm1, %v637_v18, 0.0 }
 0x3e5   :  { %397 = vadd.xlane.f32.xlu0 %v396_v19 }
 0x46e   :  { %v398_v20 = vpop.xlane.xlu0 %397 }
 0x46f   :  { %638 = vlog2.f32 %v398_v20 }
 0x47c   :  { %v639_v0 = vpop.eup %638 }
 0x47d   :  { %v400_v21 = vmul.f32 0.6931472, %v639_v0 }
 0x47f   :  { %v401_v22 = vadd.f32 %v400_v21, %v392_v15 }
 0x481   :  { %v402_v23 = vsub.f32 %v385_v12, %v401_v22 }
 0x483   :  { %404 = vst.msk [vmem:[#allocation7] sm:$0x1] %vm403_vm2, %v402_v23 }
 0x484   :  { %691 = shalt.err (!%p688_p0)
}
 0x485   :  { %414 = dma.vmem_to_hbm [thread:$0]  %s412_s1, 16, %s811_s2, [#allocation4]  }
 0x486   :  { %704 = dma.done.wait [#allocation4], 16  }
 0x487   :  { %705 = vsyncadd [#allocation4], 4294967280 }
 0x488   :  { %418 = vsyncpa [#allocation3], 1 }
 0x489   :  { %419 = vsyncpa [#allocation6], 1 }
 0x48a   :  { %420 = vsyncpa [#allocation4], 1 }

</bundles_post_ra>
